<compile_context>
chip_gen: v6e
topology: v6e:2x2x1
jax: 0.10.0
libtpu: 0.0.40
codegen_flags: <defaults>
</compile_context>

<pallas_src>
import jax
import jax.numpy as jnp
from jax.experimental import pallas as pl
from jax.experimental.pallas import tpu as pltpu


# ----------------------------- Pallas kernel --------------------------------

def _neg_scale_kernel(lam_ref, g_ref, o_ref):
    # GRL backward: -lambda * grad_output  (lambda is an f32 SMEM scalar).
    lam = lam_ref[0]
    g = g_ref[...].astype(jnp.float32)
    o_ref[...] = ((-lam) * g).astype(o_ref.dtype)


# Lane-dense layout knobs.
_COLS = 512        # last dim of the 2-D slab (multiple of 128 -> unmasked vst)
_ROW_BLOCK = 512   # max sublane rows per tile (512x512 f32 = 1 MiB / buffer)

# Minimum sublane granularity per element size (f32:8, bf16:16, int8/fp8:32).
_SUBLANE = {4: 8, 2: 16, 1: 32}


def _neg_scale_pallas(lam, g):
    """Compute -lam * g with a tiled, pipelined Pallas TPU kernel."""
    orig_shape = g.shape
    orig_dtype = g.dtype
    itemsize = jnp.dtype(orig_dtype).itemsize
    sub = _SUBLANE.get(itemsize, 8)

    total = g.size
    chunk = _COLS * sub
    padded = pl.cdiv(total, chunk) * chunk

    flat = g.reshape(-1)
    if padded != total:
        flat = jnp.pad(flat, (0, padded - total))
    rows = padded // _COLS
    g2d = flat.reshape(rows, _COLS)

    tr = min(rows, _ROW_BLOCK)          # rows is a multiple of `sub`, so is tr
    grid = (pl.cdiv(rows, tr),)

    lam_arr = jnp.asarray(lam, dtype=jnp.float32).reshape(1)

    out2d = pl.pallas_call(
        _neg_scale_kernel,
        out_shape=jax.ShapeDtypeStruct((rows, _COLS), orig_dtype),
        grid=grid,
        in_specs=[
            pl.BlockSpec(memory_space=pltpu.SMEM),          # lambda (f32 scalar)
            pl.BlockSpec((tr, _COLS), lambda i: (i, 0)),    # grad_output tile
        ],
        out_specs=pl.BlockSpec((tr, _COLS), lambda i: (i, 0)),
        input_output_aliases={1: 0},                        # write grad in place
        compiler_params=pltpu.CompilerParams(
            dimension_semantics=("parallel",)),
        cost_estimate=pl.CostEstimate(
            flops=total,
            transcendentals=0,
            bytes_accessed=2 * total * itemsize),
    )(lam_arr, g2d)

    out_flat = out2d.reshape(-1)
    if padded != total:
        out_flat = out_flat[:total]
    return out_flat.reshape(orig_shape)


# ------------------------- GRL as a custom-vjp op ----------------------------

@jax.custom_vjp
def grl(x, lambda_):
    # Forward is a pure identity (PyTorch's x.view_as(x)): no copy, no kernel.
    return x


def _grl_fwd(x, lambda_):
    return x, lambda_


def _grl_bwd(lambda_, grad_output):
    grad_input = _neg_scale_pallas(lambda_, grad_output)
    # lambda_ gets a zero cotangent (output does not depend on it in fwd).
    return (grad_input, jnp.zeros_like(jnp.asarray(lambda_)))


grl.defvjp(_grl_fwd, _grl_bwd)


class GRL:
    """JAX/Pallas equivalent of the PyTorch GRL module."""

    def __init__(self, lambda_=1.0):
        self.lambda_ = jnp.asarray(lambda_, dtype=jnp.float32)

    def set_lambda(self, lambda_):
        self.lambda_ = jnp.asarray(lambda_, dtype=jnp.float32)

    def __call__(self, x):
        return grl(x, self.lambda_)


# ---------------------------------- main -------------------------------------

if __name__ == "__main__":
    key = jax.random.PRNGKey(0)
    # NCHW input consistent with conv-style usage: batch=2, channels=4, 16x16.
    x = jax.random.normal(key, (2, 4, 16, 16), dtype=jnp.float32)

    module = GRL(lambda_=1.0)

    # Forward (identity semantics, no copy).
    y = jax.block_until_ready(module(x))
    assert y.shape == x.shape and y.dtype == x.dtype
    assert bool(jnp.allclose(y, x)), "GRL forward must be identity"

    # Backward (gradient reversal: -lambda * upstream grad).
    loss_fn = lambda x_: jnp.sum(module(x_) * 2.0)
    gx = jax.block_until_ready(jax.grad(loss_fn)(x))
    assert bool(jnp.allclose(gx, -1.0 * 2.0 * jnp.ones_like(x))), \
        "GRL backward must reverse (negate & scale) the gradient"

    # Different lambda via set_lambda.
    module.set_lambda(0.5)
    gx2 = jax.block_until_ready(jax.grad(loss_fn)(x))
    assert bool(jnp.allclose(gx2, -0.5 * 2.0 * jnp.ones_like(x)))

    # Directly exercise the backward kernel on an odd-sized tensor (padding path)
    # and on a multi-block tensor (grid > 1, ragged last block).
    k1, k2 = jax.random.split(key)
    g_odd = jax.random.normal(k1, (3, 5, 7), dtype=jnp.float32)
    out_odd = jax.block_until_ready(_neg_scale_pallas(1.5, g_odd))
    assert bool(jnp.allclose(out_odd, -1.5 * g_odd, atol=1e-6))

    g_big = jax.random.normal(k2, (8, 64, 640), dtype=jnp.float32)  # 640 rows -> 2 blocks
    out_big = jax.block_until_ready(_neg_scale_pallas(2.0, g_big))
    assert bool(jnp.allclose(out_big, -2.0 * g_big, atol=1e-6))

    print("KERNEL_OK")
</pallas_src>

<mosaic_0001>
module attributes {stable_mosaic.version = 11 : i64} {
  func.func @_neg_scale_kernel(%arg0: i32, %arg1: memref<1xf32, #tpu.memory_space<smem>>, %arg2: memref<8x512xf32, #tpu.memory_space<vmem>>, %arg3: memref<8x512xf32, #tpu.memory_space<vmem>>) attributes {dimension_semantics = [#tpu.dimension_semantics<parallel>], iteration_bounds = array<i64: 1>, scalar_prefetch = 0 : i64, scratch_operands = 0 : i64, tpu.core_type = #tpu.core_type<tc>, window_params = [{transform_indices = @transform_0, window_bounds = array<i64: 1>}, {transform_indices = @transform_1, window_bounds = array<i64: 8, 512>}, {transform_indices = @transform_2, window_bounds = array<i64: 8, 512>}]} {
    %c0 = arith.constant 0 : index
    %0 = memref.load %arg1[%c0] : memref<1xf32, #tpu.memory_space<smem>>
    %c0_0 = arith.constant 0 : index
    %c0_1 = arith.constant 0 : index
    %1 = vector.load %arg2[%c0_0, %c0_1] : memref<8x512xf32, #tpu.memory_space<vmem>>, vector<8x512xf32>
    %cst = arith.constant 0.000000e+00 : f32
    %2 = arith.subf %cst, %0 : f32
    %3 = vector.broadcast %2 : f32 to vector<8x512xf32>
    %4 = arith.mulf %3, %1 : vector<8x512xf32>
    %c0_2 = arith.constant 0 : index
    %c0_3 = arith.constant 0 : index
    %5 = vector.load %arg3[%c0_2, %c0_3] : memref<8x512xf32, #tpu.memory_space<vmem>>, vector<8x512xf32>
    tpu.vector_store %arg3[%c0_2, %c0_3], %4 {strides = array<i32>} : memref<8x512xf32, #tpu.memory_space<vmem>>, vector<8x512xf32>,
    return
  }
  func.func @transform_0(%arg0: i32) -> i32 {
    %c0_i32 = arith.constant 0 : i32
    %c0_i32_0 = arith.constant 0 : i32
    return %c0_i32 : i32
  }
  func.func @transform_1(%arg0: i32) -> (i32, i32) {
    %c0_i32 = arith.constant 0 : i32
    %c0_i32_0 = arith.constant 0 : i32
    return %arg0, %c0_i32 : i32, i32
  }
  func.func @transform_2(%arg0: i32) -> (i32, i32) {
    %c0_i32 = arith.constant 0 : i32
    %c0_i32_0 = arith.constant 0 : i32
    return %arg0, %c0_i32 : i32, i32
  }
}

</mosaic_0001>

<bundles_post_ra>
// kernel: tpu_custom_call.1
= control target key start
LH: loop header
LB: loop body
LE: loop exit
PB: predicated region body
PF: predicated region fallthrough
CT: control target
= control target key end

     0   :  { %8 = vsyncpa [#allocation4], 0  ;;  %s127_s0 = inlined_call_operand.<no memory space> [shape: f32[1], index: 0, kind: input, shape index: {}]   ;;  %s128_s1 = inlined_call_operand.hbm [shape: f32[8,512], index: 1, kind: input, shape index: {}, may-alias: {1,2}]   ;;  %s129_s2 = inlined_call_operand.hbm [shape: f32[8,512], index: 2, kind: output, shape index: {}, may-alias: {1,2}]  }
   0x1   :  { %9 = vsyncpa [#allocation5], 0  ;;  %s101_s9 = smov [#allocation3]  }
   0x2   :  { %s18_s10 = sshll.u32 %s101_s9, 4  ;;  %s19_s10 = int_to_ptr.vmem [resolvable:$true] %s18_s10 }
   0x3   :  { %s65_s11 = scalar_lea.vmem %s19_s10, 512  ;;  %p70_p1 = scmp.lt.s32.totalorder %s19_s10, %s19_s10 }
   0x4   :  { %p66_p0 = scmp.ne.s32.totalorder %s19_s10, %s65_s11  ;;  %p71_p2 = scmp.lt.s32.totalorder %s65_s11, %s65_s11 }
   0x6   :  { %p72_p3 = por %p71_p2, %p70_p1 }
   0x8   :  { %p73_p4 = pnand %p72_p3, %p66_p0 }
   0xa   :  { %76 = shalt.err (!%p73_p4)
}
   0xb   :  { %21 = dma.hbm_to_vmem [thread:$0]  %s128_s1, 512, %s19_s10, [#allocation4]  }
   0xc   :  { %97 = dma.done.wait [#allocation4], 512  }
   0xd   :  { %98 = vsyncadd [#allocation4], 4294966784  ;;  %s30_s16 = ssub.f32 0.0, %s127_s0  ;;  %s102_s17 = smov [#allocation6]   ;;  %v26_v1 = vld [vmem:[#allocation3] sm:$0xff]  ;;  %v27_v2 = vld [vmem:[#allocation3 + $0x8] sm:$0xff] }
   0xe   :  { %s46_s18 = sshll.u32 %s102_s17, 4  ;;  %v28_v3 = vld [vmem:[#allocation3 + $0x10] sm:$0xff]  ;;  %v29_v7 = vld [vmem:[#allocation3 + $0x18] sm:$0xff]  ;;  %s47_s18 = int_to_ptr.vmem [resolvable:$true] %s46_s18 }
   0xf   :  { %v31_v0 = vstv %s30_s16  ;;  %s77_s1 = scalar_lea.vmem %s47_s18, 512  ;;  %p82_p6 = scmp.lt.s32.totalorder %s47_s18, %s47_s18 }
  0x10   :  { %v32_v4 = vmul.f32 %v31_v0, %v26_v1  ;;  %v33_v5 = vmul.f32 %v31_v0, %v27_v2  ;;  %v34_v6 = vmul.f32 %v31_v0, %v28_v3  ;;  %v35_v8 = vmul.f32 %v31_v0, %v29_v7  ;;  %p78_p5 = scmp.ne.s32.totalorder %s47_s18, %s77_s1  ;;  %p83_p7 = scmp.lt.s32.totalorder %s77_s1, %s77_s1 }
  0x12   :  { %36 = vst [vmem:[#allocation6] sm:$0xff] %v32_v4  ;;  %37 = vst [vmem:[#allocation6 + $0x8] sm:$0xff] %v33_v5  ;;  %p84_p8 = por %p83_p7, %p82_p6 }
  0x13   :  { %38 = vst [vmem:[#allocation6 + $0x10] sm:$0xff] %v34_v6  ;;  %39 = vst [vmem:[#allocation6 + $0x18] sm:$0xff] %v35_v8 }
  0x14   :  { %p85_p9 = pnand %p84_p8, %p78_p5 }
  0x16   :  { %88 = shalt.err (!%p85_p9)
}
  0x17   :  { %49 = dma.vmem_to_hbm [thread:$0]  %s47_s18, 512, %s129_s2, [#allocation5]  }
  0x18   :  { %99 = dma.done.wait [#allocation5], 512  }
  0x19   :  { %100 = vsyncadd [#allocation5], 4294966784 }
  0x1a   :  { %53 = vsyncpa [#allocation4], 1 }
  0x1b   :  { %54 = vsyncpa [#allocation5], 1 }

</bundles_post_ra>
